<compile_context>
chip_gen: v5e
topology: v5e:2x2
jax: 0.10.0
libtpu: 0.0.40
codegen_flags: <defaults>
</compile_context>

<pallas_src>
import functools

import jax
import jax.numpy as jnp
from jax.experimental import pallas as pl
from jax.experimental.pallas import tpu as pltpu

EPS = 1e-5            # nn.BatchNorm2d default eps
NEG_SLOPE = 0.2       # LeakyReLU slope
KH = KW = 4           # conv kernel size
LANE = 128
VMEM_BUDGET = 12 * 1024 * 1024     # per-grid-step working-set target
VMEM_LIMIT = 32 * 1024 * 1024      # explicit scoped-VMEM limit (fits every generation)


def _round_up(x, m):
    return (x + m - 1) // m * m


def _largest_divisor_leq(n, cap):
    cap = max(1, min(n, cap))
    for d in range(cap, 0, -1):
        if n % d == 0:
            return d
    return 1


# ---------------------------------------------------------------------------
# Pass 1: space-to-depth conv (4 MXU matmuls per tile) + per-tile BN statistics.
# ---------------------------------------------------------------------------
def _conv_stats_kernel(xm_ref, xh_ref, w_ref, y_ref, stats_ref, *,
                       trow, Wo, Kc, C_pad, y_dtype):
    main = xm_ref[0]                  # [trow, Wo+1, Kc]  output rows r0 .. r0+trow-1
    halo = xh_ref[0]                  # [1,    Wo+1, Kc]  row r0+trow (shared w/ next tile)
    lo = main                                                        # row tap a=0
    hi = jnp.concatenate([main[1:], halo], axis=0) if trow > 1 else halo  # row tap a=1

    def tap(rows, c, widx):           # column tap c in {0,1};  widx = a*2 + c
        p = rows[:, c:c + Wo, :].reshape(trow * Wo, Kc)
        return jnp.dot(p, w_ref[widx], preferred_element_type=jnp.float32)

    # f32 accumulation on the MXU.
    y = tap(lo, 0, 0) + tap(lo, 1, 1) + tap(hi, 0, 2) + tap(hi, 1, 3)  # [trow*Wo, C_pad]

    # Per-tile centered statistics (combined across tiles with Chan's formula outside);
    # taken from the f32 accumulator before the (possibly bf16) store of y.
    n_rows = trow * Wo
    s = jnp.sum(y, axis=0, keepdims=True)                        # [1, C_pad]
    m_t = s * (1.0 / n_rows)
    ssc = jnp.sum((y - m_t) ** 2, axis=0, keepdims=True)         # [1, C_pad]
    stats_ref[...] = jnp.concatenate([s, ssc], axis=0).reshape(1, 1, 2, C_pad)

    y_ref[...] = y.astype(y_dtype).reshape(1, trow, Wo, C_pad)


# ---------------------------------------------------------------------------
# Pass 2: folded BatchNorm affine (scale/shift) + LeakyReLU(0.2), pure streaming.
# ---------------------------------------------------------------------------
def _bn_lrelu_kernel(y_ref, scale_ref, shift_ref, o_ref):
    z = y_ref[...].astype(jnp.float32) * scale_ref[...] + shift_ref[...]
    o_ref[...] = jnp.where(z >= 0, z, NEG_SLOPE * z)


def _reference(x, weight, gamma, beta, stride=2, conv_dtype=jnp.float32):
    """Plain-JAX reference mirroring the PyTorch module (training-mode BatchNorm)."""
    xp = jnp.pad(x, ((0, 0), (0, 0), (1, 1), (1, 1)), mode="reflect")
    y = jax.lax.conv_general_dilated(
        xp.astype(conv_dtype), weight.astype(conv_dtype),
        window_strides=(stride, stride), padding="VALID",
        dimension_numbers=("NCHW", "OIHW", "NCHW"),
        preferred_element_type=jnp.float32)
    mean = y.mean(axis=(0, 2, 3), keepdims=True)
    var = ((y - mean) ** 2).mean(axis=(0, 2, 3), keepdims=True)   # biased (training BN)
    scale = gamma.reshape(1, -1, 1, 1) * jax.lax.rsqrt(var + EPS)
    shift = beta.reshape(1, -1, 1, 1) - mean * scale
    z = y * scale + shift
    return jnp.where(z >= 0, z, NEG_SLOPE * z)


def cnn_block(x, weight, gamma, beta, stride=2, *, compute_dtype=jnp.bfloat16):
    """x: [N, C_in, H, W] f32 (NCHW).  weight: [C_out, C_in, 4, 4].  Returns NCHW f32."""
    N, C_in, H, W = x.shape
    C_out = weight.shape[0]

    if stride != 2 or H % 2 or W % 2:
        # TODO(synk): only the module's default stride-2 / even-spatial configuration is
        # lowered to Pallas; other strides fall back to plain XLA with identical semantics.
        return _reference(x, weight, gamma, beta, stride=stride)

    Ho, Wo = H // 2, W // 2
    Wc = Wo + 1
    Kc = 4 * C_in                          # channels of the space-to-depth tensor
    C_pad = _round_up(C_out, LANE)
    M = N * Ho * Wo
    esz = jnp.dtype(compute_dtype).itemsize

    # ---- glue (activation-sized, channel-minor): NHWC reflect pad + space-to-depth ----
    x_nhwc = jnp.transpose(x, (0, 2, 3, 1)).astype(compute_dtype)
    xp = jnp.pad(x_nhwc, ((0, 0), (1, 1), (1, 1), (0, 0)), mode="reflect")
    xs = xp.reshape(N, Ho + 1, 2, Wc, 2, C_in)
    xs = xs.transpose(0, 1, 3, 2, 4, 5).reshape(N, Ho + 1, Wc, Kc)
    # xs[n, q, p, (b*2+d)*C_in + ci] == xp[n, 2q+b, 2p+d, ci]

    # ---- weight reorg: w[co, ci, 2a+b, 2c+d] -> wr[a*2+c, (b*2+d)*C_in+ci, co] ----
    w6 = weight.reshape(C_out, C_in, 2, 2, 2, 2)
    wr = jnp.transpose(w6, (2, 4, 3, 5, 1, 0)).reshape(4, Kc, C_out)
    wr = jnp.pad(wr, ((0, 0), (0, 0), (0, C_pad - C_out))).astype(compute_dtype)

    gamma_p = jnp.pad(gamma.astype(jnp.float32), (0, C_pad - C_out), constant_values=1.0)
    beta_p = jnp.pad(beta.astype(jnp.float32), (0, C_pad - C_out))

    # ---- pass-1 row tile: VMEM-budget derived; >=2 row tiles per image if possible ----
    fixed = 4 * Kc * C_pad * esz + 2 * Wc * Kc * esz
    row_bytes = (2 * Wc * Kc * esz        # xs main block, double-buffered
                 + Wc * Kc * esz          # shifted-row copy in VMEM
                 + 2 * Wo * Kc * esz      # per-tap patch temporaries
                 + 2 * Wo * C_pad * esz   # y output block, double-buffered
                 + 3 * Wo * C_pad * 4)    # f32 accumulator + stats temporaries
    cap1 = max(1, (VMEM_BUDGET - fixed) // row_bytes)
    if Ho >= 2:
        cap1 = min(cap1, Ho // 2)         # >=2 row tiles -> pipelining + megacore work
    trow = _largest_divisor_leq(Ho, cap1)
    R = Ho // trow

    kernel1 = functools.partial(_conv_stats_kernel, trow=trow, Wo=Wo, Kc=Kc,
                                C_pad=C_pad, y_dtype=compute_dtype)
    y, stats = pl.pallas_call(
        kernel1,
        out_shape=(
            jax.ShapeDtypeStruct((N, Ho, Wo, C_pad), compute_dtype),   # conv result
            jax.ShapeDtypeStruct((N, R, 2, C_pad), jnp.float32),       # per-tile stats
        ),
        grid_spec=pltpu.PrefetchScalarGridSpec(
            num_scalar_prefetch=0,
            grid=(N, R),
            in_specs=[
                pl.BlockSpec((1, trow, Wc, Kc), lambda n, r: (n, r, 0, 0)),
                pl.BlockSpec((1, 1, Wc, Kc), lambda n, r: (n, (r + 1) * trow, 0, 0)),
                pl.BlockSpec(memory_space=pltpu.MemorySpace.VMEM),     # weight: resident
            ],
            out_specs=(
                pl.BlockSpec((1, trow, Wo, C_pad), lambda n, r: (n, r, 0, 0)),
                pl.BlockSpec((1, 1, 2, C_pad), lambda n, r: (n, r, 0, 0)),
            ),
        ),
        compiler_params=pltpu.CompilerParams(
            dimension_semantics=("parallel", "parallel"),
            vmem_limit_bytes=VMEM_LIMIT,
        ),
        cost_estimate=pl.CostEstimate(
            flops=2 * M * 4 * Kc * C_pad,
            transcendentals=0,
            bytes_accessed=(N * (Ho + 1 + R) * Wc * Kc * esz + 4 * Kc * C_pad * esz
                            + M * C_pad * esz + N * R * 2 * C_pad * 4),
        ),
    )(xs, xs, wr)

    # ---- tiny f32 finalize: Chan combine -> fold BN into per-channel scale & shift ----
    n_rows = trow * Wo
    s = stats[:, :, 0, :]                                    # [N, R, C_pad]
    ssc = stats[:, :, 1, :]
    mean = jnp.sum(s, axis=(0, 1)) / M
    m_t = s / n_rows
    var = (jnp.sum(ssc, axis=(0, 1))
           + n_rows * jnp.sum((m_t - mean) ** 2, axis=(0, 1))) / M   # biased (training BN)
    scale = gamma_p * jax.lax.rsqrt(var + EPS)
    shift = beta_p - mean * scale

    # ---- pass-2 row tile: pure streaming, so use a larger tile than pass 1 ----
    row2_bytes = Wo * C_pad * (2 * esz + 2 * 4 + 2 * 4)
    cap2 = max(1, VMEM_BUDGET // row2_bytes)
    if N == 1 and Ho >= 2:
        cap2 = min(cap2, Ho // 2)          # keep >=2 grid steps even for batch 1
    trow2 = _largest_divisor_leq(Ho, cap2)
    R2 = Ho // trow2

    out = pl.pallas_call(
        _bn_lrelu_kernel,
        out_shape=jax.ShapeDtypeStruct((N, Ho, Wo, C_pad), jnp.float32),
        grid_spec=pltpu.PrefetchScalarGridSpec(
            num_scalar_prefetch=0,
            grid=(N, R2),
            in_specs=[
                pl.BlockSpec((1, trow2, Wo, C_pad), lambda n, r: (n, r, 0, 0)),
                pl.BlockSpec(memory_space=pltpu.MemorySpace.VMEM),     # scale: resident
                pl.BlockSpec(memory_space=pltpu.MemorySpace.VMEM),     # shift: resident
            ],
            out_specs=pl.BlockSpec((1, trow2, Wo, C_pad), lambda n, r: (n, r, 0, 0)),
        ),
        compiler_params=pltpu.CompilerParams(
            dimension_semantics=("parallel", "parallel"),
            vmem_limit_bytes=VMEM_LIMIT,
        ),
        cost_estimate=pl.CostEstimate(
            flops=4 * M * C_pad,
            transcendentals=0,
            bytes_accessed=M * C_pad * (esz + 4) + 2 * C_pad * 4,
        ),
    )(y, scale.reshape(1, C_pad), shift.reshape(1, C_pad))

    if C_pad != C_out:
        out = out[..., :C_out]
    # NHWC -> NCHW only to match the PyTorch module's output layout; an NHWC consumer
    # should take `out` as-is and skip this extra HBM round trip.
    return jnp.transpose(out, (0, 3, 1, 2))


if __name__ == "__main__":
    key = jax.random.PRNGKey(0)
    kx, kw = jax.random.split(key)

    N, C_in, H, W = 2, 4, 16, 16
    C_out, stride = 8, 2

    x = jax.random.normal(kx, (N, C_in, H, W), dtype=jnp.float32)
    weight = 0.1 * jax.random.normal(kw, (C_out, C_in, KH, KW), dtype=jnp.float32)
    gamma = 1.0 + 0.1 * jnp.arange(C_out, dtype=jnp.float32)
    beta = 0.05 * jnp.arange(C_out, dtype=jnp.float32)

    ref = _reference(x, weight, gamma, beta, stride=stride)

    # f32 compute path: tight structural check (space-to-depth conv, halo tiling,
    # Chan-combined BN statistics, fused epilogue) against the XLA reference.
    out_f32 = jax.block_until_ready(
        cnn_block(x, weight, gamma, beta, stride=stride, compute_dtype=jnp.float32))
    assert out_f32.shape == (N, C_out, H // 2, W // 2), out_f32.shape
    assert jnp.allclose(out_f32, ref, atol=1e-3, rtol=1e-3), \
        float(jnp.max(jnp.abs(out_f32 - ref)))

    # Default fast path (bf16 MXU operands + bf16 y round trip, f32 statistics):
    # looser sanity tolerance covering bf16 quantization.
    out = jax.block_until_ready(cnn_block(x, weight, gamma, beta, stride=stride))
    assert out.shape == (N, C_out, H // 2, W // 2), out.shape
    assert jnp.allclose(out, ref, atol=8e-2, rtol=8e-2), \
        float(jnp.max(jnp.abs(out - ref)))

    print("KERNEL_OK")
</pallas_src>

<mosaic_0001>
module attributes {stable_mosaic.version = 11 : i64} {
  func.func @_conv_stats_kernel(%arg0: i32, %arg1: i32, %arg2: memref<1x4x9x16xf32, #tpu.memory_space<vmem>>, %arg3: memref<1x1x9x16xf32, #tpu.memory_space<vmem>>, %arg4: memref<4x16x128xf32, #tpu.memory_space<vmem>>, %arg5: memref<1x4x8x128xf32, #tpu.memory_space<vmem>>, %arg6: memref<1x1x2x128xf32, #tpu.memory_space<vmem>>) attributes {dimension_semantics = [#tpu.dimension_semantics<parallel>, #tpu.dimension_semantics<parallel>], iteration_bounds = array<i64: 2, 2>, scalar_prefetch = 0 : i64, scratch_operands = 0 : i64, tpu.core_type = #tpu.core_type<tc>, window_params = [{transform_indices = @transform_0, window_bounds = array<i64: 1, 4, 9, 16>}, {transform_indices = @transform_1, window_bounds = array<i64: 1, 1, 9, 16>}, {pipeline_mode = #tpu.pipeline_mode<synchronous>, transform_indices = @transform_2, window_bounds = array<i64: 4, 16, 128>}, {transform_indices = @transform_3, window_bounds = array<i64: 1, 4, 8, 128>}, {transform_indices = @transform_4, window_bounds = array<i64: 1, 1, 2, 128>}]} {
    %c0 = arith.constant 0 : index
    %c0_0 = arith.constant 0 : index
    %c0_1 = arith.constant 0 : index
    %c0_2 = arith.constant 0 : index
    %0 = vector.load %arg2[%c0, %c0_0, %c0_1, %c0_2] : memref<1x4x9x16xf32, #tpu.memory_space<vmem>>, vector<1x4x9x16xf32>
    %1 = vector.shape_cast %0 : vector<1x4x9x16xf32> to vector<4x9x16xf32>
    %c0_3 = arith.constant 0 : index
    %c0_4 = arith.constant 0 : index
    %c0_5 = arith.constant 0 : index
    %c0_6 = arith.constant 0 : index
    %2 = vector.load %arg3[%c0_3, %c0_4, %c0_5, %c0_6] : memref<1x1x9x16xf32, #tpu.memory_space<vmem>>, vector<1x1x9x16xf32>
    %3 = vector.shape_cast %2 : vector<1x1x9x16xf32> to vector<1x9x16xf32>
    %4 = vector.extract_strided_slice %1 {offsets = [1, 0, 0], sizes = [3, 9, 16], strides = [1, 1, 1]} : vector<4x9x16xf32> to vector<3x9x16xf32>
    %5 = tpu.concatenate %4, %3 in 0 : vector<3x9x16xf32>, vector<1x9x16xf32> -> vector<4x9x16xf32>
    %6 = vector.extract_strided_slice %1 {offsets = [0, 0, 0], sizes = [4, 8, 16], strides = [1, 1, 1]} : vector<4x9x16xf32> to vector<4x8x16xf32>
    %7 = vector.shape_cast %6 : vector<4x8x16xf32> to vector<32x16xf32>
    %c0_7 = arith.constant 0 : index
    %c0_8 = arith.constant 0 : index
    %c0_9 = arith.constant 0 : index
    %8 = vector.load %arg4[%c0_7, %c0_8, %c0_9] : memref<4x16x128xf32, #tpu.memory_space<vmem>>, vector<1x16x128xf32>
    %9 = vector.shape_cast %8 : vector<1x16x128xf32> to vector<16x128xf32>
    %cst = arith.constant dense<0.000000e+00> : vector<32x128xf32>
    %10 = tpu.matmul %7, %9, %cst {dimension_numbers = #tpu.dot_dimension_numbers<[1], [0], [0], [1], [0, 0, 1, 1], [], []>} : vector<32x16xf32>, vector<16x128xf32>, vector<32x128xf32> -> vector<32x128xf32>
    %11 = vector.extract_strided_slice %1 {offsets = [0, 1, 0], sizes = [4, 8, 16], strides = [1, 1, 1]} : vector<4x9x16xf32> to vector<4x8x16xf32>
    %12 = vector.shape_cast %11 : vector<4x8x16xf32> to vector<32x16xf32>
    %c1 = arith.constant 1 : index
    %c0_10 = arith.constant 0 : index
    %c0_11 = arith.constant 0 : index
    %13 = vector.load %arg4[%c1, %c0_10, %c0_11] : memref<4x16x128xf32, #tpu.memory_space<vmem>>, vector<1x16x128xf32>
    %14 = vector.shape_cast %13 : vector<1x16x128xf32> to vector<16x128xf32>
    %cst_12 = arith.constant dense<0.000000e+00> : vector<32x128xf32>
    %15 = tpu.matmul %12, %14, %cst_12 {dimension_numbers = #tpu.dot_dimension_numbers<[1], [0], [0], [1], [0, 0, 1, 1], [], []>} : vector<32x16xf32>, vector<16x128xf32>, vector<32x128xf32> -> vector<32x128xf32>
    %16 = arith.addf %10, %15 : vector<32x128xf32>
    %17 = vector.extract_strided_slice %5 {offsets = [0, 0, 0], sizes = [4, 8, 16], strides = [1, 1, 1]} : vector<4x9x16xf32> to vector<4x8x16xf32>
    %18 = vector.shape_cast %17 : vector<4x8x16xf32> to vector<32x16xf32>
    %c2 = arith.constant 2 : index
    %c0_13 = arith.constant 0 : index
    %c0_14 = arith.constant 0 : index
    %19 = vector.load %arg4[%c2, %c0_13, %c0_14] : memref<4x16x128xf32, #tpu.memory_space<vmem>>, vector<1x16x128xf32>
    %20 = vector.shape_cast %19 : vector<1x16x128xf32> to vector<16x128xf32>
    %cst_15 = arith.constant dense<0.000000e+00> : vector<32x128xf32>
    %21 = tpu.matmul %18, %20, %cst_15 {dimension_numbers = #tpu.dot_dimension_numbers<[1], [0], [0], [1], [0, 0, 1, 1], [], []>} : vector<32x16xf32>, vector<16x128xf32>, vector<32x128xf32> -> vector<32x128xf32>
    %22 = arith.addf %16, %21 : vector<32x128xf32>
    %23 = vector.extract_strided_slice %5 {offsets = [0, 1, 0], sizes = [4, 8, 16], strides = [1, 1, 1]} : vector<4x9x16xf32> to vector<4x8x16xf32>
    %24 = vector.shape_cast %23 : vector<4x8x16xf32> to vector<32x16xf32>
    %c3 = arith.constant 3 : index
    %c0_16 = arith.constant 0 : index
    %c0_17 = arith.constant 0 : index
    %25 = vector.load %arg4[%c3, %c0_16, %c0_17] : memref<4x16x128xf32, #tpu.memory_space<vmem>>, vector<1x16x128xf32>
    %26 = vector.shape_cast %25 : vector<1x16x128xf32> to vector<16x128xf32>
    %cst_18 = arith.constant dense<0.000000e+00> : vector<32x128xf32>
    %27 = tpu.matmul %24, %26, %cst_18 {dimension_numbers = #tpu.dot_dimension_numbers<[1], [0], [0], [1], [0, 0, 1, 1], [], []>} : vector<32x16xf32>, vector<16x128xf32>, vector<32x128xf32> -> vector<32x128xf32>
    %28 = arith.addf %22, %27 : vector<32x128xf32>
    %cst_19 = arith.constant dense<0.000000e+00> : vector<128xf32>
    %29 = vector.multi_reduction <add>, %28, %cst_19 [0] : vector<32x128xf32> to vector<128xf32>
    %30 = vector.shape_cast %29 : vector<128xf32> to vector<1x128xf32>
    %cst_20 = arith.constant 3.125000e-02 : f32
    %31 = vector.broadcast %cst_20 : f32 to vector<1x128xf32>
    %32 = arith.mulf %30, %31 : vector<1x128xf32>
    %33 = vector.broadcast %32 : vector<1x128xf32> to vector<32x128xf32>
    %34 = arith.subf %28, %33 : vector<32x128xf32>
    %35 = arith.mulf %34, %34 : vector<32x128xf32>
    %cst_21 = arith.constant dense<0.000000e+00> : vector<128xf32>
    %36 = vector.multi_reduction <add>, %35, %cst_21 [0] : vector<32x128xf32> to vector<128xf32>
    %37 = vector.shape_cast %36 : vector<128xf32> to vector<1x128xf32>
    %38 = tpu.concatenate %30, %37 in 0 : vector<1x128xf32>, vector<1x128xf32> -> vector<2x128xf32>
    %39 = vector.shape_cast %38 : vector<2x128xf32> to vector<1x1x2x128xf32>
    %c0_22 = arith.constant 0 : index
    %c0_23 = arith.constant 0 : index
    %c0_24 = arith.constant 0 : index
    %c0_25 = arith.constant 0 : index
    %40 = vector.load %arg6[%c0_22, %c0_23, %c0_24, %c0_25] : memref<1x1x2x128xf32, #tpu.memory_space<vmem>>, vector<1x1x2x128xf32>
    tpu.vector_store %arg6[%c0_22, %c0_23, %c0_24, %c0_25], %39 {strides = array<i32>} : memref<1x1x2x128xf32, #tpu.memory_space<vmem>>, vector<1x1x2x128xf32>,
    %41 = vector.shape_cast %28 : vector<32x128xf32> to vector<1x4x8x128xf32>
    %c0_26 = arith.constant 0 : index
    %c0_27 = arith.constant 0 : index
    %c0_28 = arith.constant 0 : index
    %c0_29 = arith.constant 0 : index
    %42 = vector.load %arg5[%c0_26, %c0_27, %c0_28, %c0_29] : memref<1x4x8x128xf32, #tpu.memory_space<vmem>>, vector<1x4x8x128xf32>
    tpu.vector_store %arg5[%c0_26, %c0_27, %c0_28, %c0_29], %41 {strides = array<i32>} : memref<1x4x8x128xf32, #tpu.memory_space<vmem>>, vector<1x4x8x128xf32>,
    return
  }
  func.func @transform_0(%arg0: i32, %arg1: i32) -> (i32, i32, i32, i32) {
    %c0_i32 = arith.constant 0 : i32
    %c0_i32_0 = arith.constant 0 : i32
    %c0_i32_1 = arith.constant 0 : i32
    return %arg0, %arg1, %c0_i32, %c0_i32_0 : i32, i32, i32, i32
  }
  func.func @transform_1(%arg0: i32, %arg1: i32) -> (i32, i32, i32, i32) {
    %c1_i32 = arith.constant 1 : i32
    %0 = arith.addi %arg1, %c1_i32 : i32
    %c4_i32 = arith.constant 4 : i32
    %1 = arith.muli %0, %c4_i32 : i32
    %c0_i32 = arith.constant 0 : i32
    %c0_i32_0 = arith.constant 0 : i32
    %c0_i32_1 = arith.constant 0 : i32
    return %arg0, %1, %c0_i32, %c0_i32_0 : i32, i32, i32, i32
  }
  func.func @transform_2(%arg0: i32, %arg1: i32) -> (i32, i32, i32) {
    %c0_i32 = arith.constant 0 : i32
    %c0_i32_0 = arith.constant 0 : i32
    %c0_i32_1 = arith.constant 0 : i32
    %c0_i32_2 = arith.constant 0 : i32
    return %c0_i32, %c0_i32_0, %c0_i32_1 : i32, i32, i32
  }
  func.func @transform_3(%arg0: i32, %arg1: i32) -> (i32, i32, i32, i32) {
    %c0_i32 = arith.constant 0 : i32
    %c0_i32_0 = arith.constant 0 : i32
    %c0_i32_1 = arith.constant 0 : i32
    return %arg0, %arg1, %c0_i32, %c0_i32_0 : i32, i32, i32, i32
  }
  func.func @transform_4(%arg0: i32, %arg1: i32) -> (i32, i32, i32, i32) {
    %c0_i32 = arith.constant 0 : i32
    %c0_i32_0 = arith.constant 0 : i32
    %c0_i32_1 = arith.constant 0 : i32
    return %arg0, %arg1, %c0_i32, %c0_i32_0 : i32, i32, i32, i32
  }
}

</mosaic_0001>

<bundles_post_ra>
// kernel: tpu_custom_call.1
= control target key start
LH: loop header
LB: loop body
LE: loop exit
PB: predicated region body
PF: predicated region fallthrough
CT: control target
= control target key end

     0   :  { %10 = vsyncpa [#allocation3], 0  ;;  %s1223_s0 = inlined_call_operand.vmem [shape: f32[2,9,9,16], index: 0, kind: input, shape index: {}]   ;;  %s1224_s1 = inlined_call_operand.vmem [shape: f32[2,9,9,16], index: 1, kind: input, shape index: {}]   ;;  %s1225_s2 = inlined_call_operand.vmem [shape: f32[4,16,128], index: 2, kind: input, shape index: {}]   ;;  %s1226_s3 = inlined_call_operand.hbm [shape: f32[2,8,8,128], index: 3, kind: output, shape index: {0}]   ;;  %s1227_s4 = inlined_call_operand.hbm [shape: f32[2,2,2,128], index: 4, kind: output, shape index: {1}]  }
   0x1   :  { %12 = vsyncpa [#allocation3 + $0x1], 0 }
   0x2   :  { %13 = vsyncpa [#allocation5], 0 }
   0x3   :  { %15 = vsyncpa [#allocation5 + $0x1], 0  ;;  %s1008_s15 = smov 0   ;;  %s1010_s16 = smov 0  }
   0x4   :  { %s1012_s17 = smov 0   ;;  %s1014_s18 = smov 0  }
   0x5   :  { %s1016_s19 = smov 0   ;;  %s1018_s20 = smov 0  }
   0x6   :  { %s1020_s21 = smov 0   ;;  %s1022_s22 = smov 0  }
   0x7 LB: > { %s722_s23 = sadd.s32 4294967295, %s979_s22   ;;  %s723_s24 = sadd.s32 4294967294, %s979_s22   ;;  %s979_s22 = sphi %s1022_s22, %s21_s22   ;;  %s975_s21 = sphi %s1020_s21, %s1237_s21   ;;  %s971_s20 = sphi %s1018_s20, %s1236_s20   ;;  %s967_s19 = sphi %s1016_s19, %s1235_s19   ;;  %s963_s18 = sphi %s1014_s18, %s1234_s18   ;;  %s959_s17 = sphi %s1012_s17, %s1233_s17   ;;  %s955_s16 = sphi %s1010_s16, %s1232_s16   ;;  %s951_s15 = sphi %s1008_s15, %s1231_s15  }
   0x8   : > { %s30_s25 = sadd.s32 1, %s971_s20  ;;  %s33_s26 = sadd.s32 1, %s975_s21 }
   0x9   : > { %p31_p0 = scmp.ge.s32.totalorder %s30_s25, 2  ;;  %p133_p1 = scmp.ne.s32.totalorder %s959_s17, %s955_s16 }
   0xa   : > { %p134_p2 = scmp.eq.s32.totalorder %s722_s23, 3  ;;  %p139_p5 = scmp.ne.s32.totalorder %s955_s16, %s951_s15 }
   0xb   : > { %s1239_s25 = smov (%p31_p0, %s30_s25), 0  ;;  %s1241_s26 = smov (!%p31_p0, %s33_s26), %s975_s21 }
   0xc   : > { %s119_s27 = ssub.s32 %s971_s20, %s1239_s25  ;;  %p1059_p3 = por %p134_p2, %p133_p1 }
   0xd   : > { %p35_p4 = scmp.ge.s32.totalorder %s1241_s26, 2  ;;  %p140_p6 = scmp.eq.s32.totalorder %s723_s24, 3 }
   0xe   : > { %p728_p7 = scmp.ge.s32.totalorder %s979_s22, 1  ;;  %p229_p9 = scmp.lt.s32.totalorder %s979_s22, 5 }
   0xf   : > { %s1243_s26 = smov (%p35_p4, %s1241_s26), 0  ;;  %p1068_p8 = por %p140_p6, %p139_p5 }
  0x10   : > { %s118_s30 = ssub.s32 %s975_s21, %s1243_s26  ;;  %s123_s5 = sadd.s32 1, %s959_s17 }
  0x11   : > { %s120_s6 = sor.u32 %s119_s27, %s118_s30  ;;  %p230_p10 = pnand %p728_p7, %p229_p9 }
  0x12   : > { %p121_p11 = scmp.eq.s32.totalorder %s120_s6, 0  ;;  %s1089_s14 = sshll.u32 (!%p230_p10), %s963_s18, 2 }
  0x13   : > { %233 = sbr.rel (%p230_p10) target bundleno = 235 (0xeb), region = 32  ;;  %p287_p12 = scmp.lt.s32.totalorder (!%p230_p10), %s967_s19, 1 }
  0x14   : > { %s1077_s7 = scalar_select %p121_p11, %s959_s17, %s123_s5  }
  0x15   : > { %p289_p13 = scmp.lt.s32.totalorder (!%p230_p10), %s1089_s14, 8  ;;  %s773_s24 = sadd.s32 (!%p230_p10), 4, %s1089_s14 }
  0x16   : > { %p1116_p0 = scmp.lt.s32.totalorder (!%p230_p10), %s773_s24, 8  ;;  %s762_s9 = sshll.u32 (!%p230_p10), %s967_s19, 3 }
  0x17   : > { %s559_s10 = sadd.s32 (!%p230_p10), %s762_s9, %s1089_s14 }
  0x18   : > { %v748_v0 = vld [vmem:[%s1225_s2 + $0x28] sm:$0xff]  ;;  %v747_v1 = vld [vmem:[%s1225_s2 + $0x20] sm:$0xff]  ;;  %v754_v2 = vld [vmem:[%s1225_s2 + $0x38] sm:$0xff]  ;;  %s1103_s8 = scalar_select %p287_p12, %s967_s19, 1  ;;  %vm352_vm0 = vcmask 130048   ;;  %vm336_vm1 = vcmask 1046528  }
  0x19   : > { %447 = vmatpush.msra.mxu2 %v748_v0  ;;  %489 = vmatpush.msra.mxu3 %v754_v2  ;;  %v738_v3 = vld [vmem:[%s1225_s2 + $0x18] sm:$0xff]  ;;  %v327_v4 = vld [vmem:[%s1225_s2 + $0x8] sm:$0xff]  ;;  %v753_v5 = vld [vmem:[%s1225_s2 + $0x30] sm:$0xff]  ;;  %s290_s13 = scalar_select %p289_p13, %s1089_s14, 8 }
  0x1a   : > { %375 = vmatpush.msra.mxu0 %v738_v3  ;;  %412 = vmatpush.msra.mxu1 %v327_v4  ;;  %v737_v6 = vld [vmem:[%s1225_s2 + $0x10] sm:$0xff]  ;;  %v326_v7 = vld [vmem:[%s1225_s2] sm:$0xff]  ;;  %s774_s23 = smul.u32 18, %s1103_s8  ;;  %s1245_s24 = smov (!%p1116_p0, %s773_s24), 8 }
  0x1b   : > { %448 = vmatpush.msra.mxu2 %v747_v1  ;;  %490 = vmatpush.msra.mxu3 %v753_v5  ;;  %s732_s27 = sshll.u32 %s290_s13, 1  ;;  %s735_s12 = sshll.u32 %s1245_s24, 1 }
  0x1c   : > { %376 = vmatpush.msra.mxu0 %v737_v6  ;;  %413 = vmatpush.msra.mxu1 %v326_v7  ;;  %s293_s30 = sadd.s32 %s774_s23, %s732_s27  ;;  %s310_s13 = sadd.s32 %s774_s23, %s735_s12 }
  0x1d   : > { %s733_s5 = sshll.u32 %s293_s30, 3  ;;  %s736_s27 = sshll.u32 %s310_s13, 3 }
  0x1e   : > { %s295_s11 = scalar_lea.vmem %s1223_s0, %s733_s5  ;;  %s312_s24 = scalar_lea.vmem %s1224_s1, %s736_s27 }
  0x1f   : > { %v318_v8 = vld [vmem:[%s295_s11 + $0x10] sm:$0xff]  ;;  %v319_v9 = vld [vmem:[%s295_s11 + $0x18] sm:$0x1]  ;;  %v316_v10 = vld [vmem:[%s295_s11] sm:$0xff]  ;;  %s1152_s8 = sand.u32 1, %s955_s16  }
  0x20   : > { %v340_v11 = vrot.slane %v318_v8, 1  ;;  %749 = vmatmul.msk.f32.vlgmr.msra.gmra.mxu2 %vm352_vm0, %v318_v8  ;;  %v341_v12 = vrot.slane %v319_v9, 1  ;;  %v317_v13 = vld [vmem:[%s295_s11 + $0x8] sm:$0x1]  ;;  %v337_v14 = vrot.slane %v316_v10, 1  ;;  %743 = vmatmul.msk.f32.vlgmr.msra.gmra.mxu1 %vm352_vm0, %v316_v10  ;;  %v320_v16 = vld [vmem:[%s295_s11 + $0x20] sm:$0xff] }
  0x21   : > { %v338_v15 = vrot.slane %v317_v13, 1  ;;  %v321_v17 = vld [vmem:[%s295_s11 + $0x28] sm:$0x1]  ;;  %v343_v20 = vrot.slane %v320_v16, 1  ;;  %v322_v23 = vld [vmem:[%s295_s11 + $0x30] sm:$0xff]  ;;  %v324_v28 = vld [vmem:[%s312_s24] sm:$0xff] }
  0x22   : > { %v342_v18 = vsel %vm336_vm1, %v340_v11, %v341_v12  ;;  %v344_v21 = vrot.slane %v321_v17, 1  ;;  %v323_v24 = vld [vmem:[%s295_s11 + $0x38] sm:$0x1]  ;;  %v346_v25 = vrot.slane %v322_v23, 1  ;;  %v325_v29 = vld [vmem:[%s312_s24 + $0x8] sm:$0x1] }
  0x23   : > { %755 = vmatmul.msk.f32.vlgmr.msra.gmra.mxu3 %vm352_vm0, %v342_v18  ;;  %v339_v19 = vsel %vm336_vm1, %v337_v14, %v338_v15  ;;  %v347_v26 = vrot.slane %v323_v24, 1  ;;  %v467_v30 = vrot.slane %v324_v28, 1  ;;  %v468_v31 = vrot.slane %v325_v29, 1  ;;  %s729_s23 = sshll.u32 %s1152_s8, 5  ;;  %s763_s11 = sshll.u32 %s559_s10, 3 }
  0x24   : > { %739 = vmatmul.msk.f32.vlgmr.msra.gmra.mxu0 %vm352_vm0, %v339_v19  ;;  %v345_v22 = vsel %vm336_vm1, %v343_v20, %v344_v21  ;;  %s1155_s6 = scalar_lea.vmem [#allocation2], %s729_s23  ;;  %s561_s27 = scalar_lea.hbm %s1226_s3, %s763_s11 }
  0x25   : > { %v348_v27 = vsel %vm336_vm1, %v346_v25, %v347_v26  ;;  %v469_v32 = vsel %vm336_vm1, %v467_v30, %v468_v31  ;;  %s562_s30 = sshll.u32 %s1155_s6, 4  ;;  %s564_s5 = sshll.u32 %s561_s27, 4  ;;  %s563_s30 = int_to_ptr.vmem [resolvable:$true] %s562_s30  ;;  %s565_s5 = int_to_ptr.hbm [resolvable:$true] %s564_s5 }
  0x26   : > { %s543_s14 = scalar_lea.sflag [#allocation3], %s1152_s8  ;;  %s867_s24 = sshra.s32 %s565_s5, 4  ;;  %s868_s24 = int_to_ptr.hbm [resolvable:$true] %s867_s24 }
  0x27   : > { %s869_s23 = scalar_lea.hbm %s868_s24, 32  ;;  %s873_s11 = scalar_lea.hbm %s1226_s3, 128 }
  0x28   : > { %750 = vmatmul.msk.f32.gmra.mxu2 %vm352_vm0, %v320_v16  ;;  %744 = vmatmul.msk.f32.gmra.mxu1 %vm352_vm0, %v318_v8  ;;  %p870_p1 = scmp.ne.s32.totalorder %s868_s24, %s869_s23  ;;  %p874_p5 = scmp.lt.s32.totalorder %s868_s24, %s1226_s3 }
  0x29   : > { %p875_p6 = scmp.lt.s32.totalorder %s873_s11, %s869_s23 }
  0x2a   : > { %p871_p2 = pnand %p870_p1, %p1059_p3 }
  0x2b   : > { %756 = vmatmul.msk.f32.gmra.mxu3 %vm352_vm0, %v345_v22  ;;  %p876_p7 = por %p875_p6, %p874_p5 }
  0x2c   : > { %740 = vmatmul.msk.f32.gmra.mxu0 %vm352_vm0, %v342_v18  ;;  %p872_p4 = pneg %p871_p2 }
  0x2e   : > { %p877_p9 = pnand %p876_p7, %p872_p4 }
  0x30   : > { %751 = vmatmul.msk.f32.gmra.mxu2 %vm352_vm0, %v322_v23  ;;  %745 = vmatmul.msk.f32.gmra.mxu1 %vm352_vm0, %v320_v16 }
  0x33   : > { %757 = vmatmul.msk.f32.gmra.mxu3 %vm352_vm0, %v348_v27 }
  0x34   : > { %741 = vmatmul.msk.f32.gmra.mxu0 %vm352_vm0, %v345_v22 }
  0x38   : > { %752 = vmatmul.msk.f32.gmra.mxu2 %vm352_vm0, %v324_v28  ;;  %746 = vmatmul.msk.f32.gmra.mxu1 %vm352_vm0, %v322_v23 }
  0x3b   : > { %758 = vmatmul.msk.f32.gmra.mxu3 %vm352_vm0, %v469_v32 }
  0x3c   : > { %742 = vmatmul.msk.f32.gmra.mxu0 %vm352_vm0, %v348_v27 }
  0x9d   : > { %v415_v33 = vpop.f32.mrf.mxu1 }
  0xa1   : > { %v378_v34 = vpop.f32.mrf.mxu0 }
  0xa2   : > { %v416_v35 = vadd.f32 %v415_v33, %v378_v34 }
  0xa3   : > { %v450_v36 = vpop.f32.mrf.mxu2 }
  0xa4   : > { %v462_v37 = vadd.f32 %v450_v36, %v416_v35 }
  0xa5   : > { %v418_v38 = vpop.f32.mrf.mxu1 }
  0xa6   : > { %v492_v39 = vpop.f32.mrf.mxu3 }
  0xa7   : > { %v504_v40 = vadd.f32 %v492_v39, %v462_v37 }
  0xa9   : > { %538 = vst [vmem:[%s1155_s6] sm:$0xff] %v504_v40  ;;  %v381_v41 = vpop.f32.mrf.mxu0 }
  0xaa   : > { %v419_v42 = vadd.f32 %v418_v38, %v381_v41 }
  0xab   : > { %v453_v43 = vpop.f32.mrf.mxu2 }
  0xac   : > { %v463_v44 = vadd.f32 %v453_v43, %v419_v42 }
  0xad   : > { %v421_v45 = vpop.f32.mrf.mxu1 }
  0xae   : > { %v495_v46 = vpop.f32.mrf.mxu3 }
  0xaf   : > { %v505_v47 = vadd.f32 %v495_v46, %v463_v44 }
  0xb1   : > { %539 = vst [vmem:[%s1155_s6 + $0x8] sm:$0xff] %v505_v47  ;;  %v384_v48 = vpop.f32.mrf.mxu0  ;;  %v508_v59 = vadd.f32 %v505_v47, %v504_v40 }
  0xb2   : > { %v422_v49 = vadd.f32 %v421_v45, %v384_v48 }
  0xb3   : > { %v456_v50 = vpop.f32.mrf.mxu2 }
  0xb4   : > { %v464_v51 = vadd.f32 %v456_v50, %v422_v49 }
  0xb5   : > { %v424_v54 = vpop.f32.mrf.mxu1 }
  0xb6   : > { %v498_v52 = vpop.f32.mrf.mxu3 }
  0xb7   : > { %v506_v53 = vadd.f32 %v498_v52, %v464_v51 }
  0xb9   : > { %540 = vst [vmem:[%s1155_s6 + $0x10] sm:$0xff] %v506_v53  ;;  %v387_v55 = vpop.f32.mrf.mxu0  ;;  %v509_v61 = vadd.f32 %v508_v59, %v506_v53 }
  0xba   : > { %v425_v56 = vadd.f32 %v424_v54, %v387_v55 }
  0xbb   : > { %v459_v57 = vpop.f32.mrf.mxu2 }
  0xbc   : > { %v465_v58 = vadd.f32 %v459_v57, %v425_v56 }
  0xbe   : > { %v501_v60 = vpop.f32.mrf.mxu3 }
  0xbf   : > { %v507_v62 = vadd.f32 %v501_v60, %v465_v58 }
  0xc1   : > { %v510_v63 = vadd.f32 %v509_v61, %v507_v62  ;;  %541 = vst [vmem:[%s1155_s6 + $0x18] sm:$0xff] %v507_v62 }
  0xc2   : > { %880 = shalt.err (!%p877_p9)
}
  0xc3   : > { %s981_s6 = smov 128   ;;  %s982_s27 = smov 8   ;;  %v511_v0 = vrot.slane %v510_v63, 4  ;;  %vm535_vm2 = vcmask 1040384  }
  0xc4   : > { %775 = dma.vmem_to_hbm [thread:$0]  (%p1059_p3), %s563_s30, 512, %s565_s5, %s543_s14, %s981_s6, %s981_s6, %s982_s27  }
  0xc5   : > { %v512_v1 = vadd.f32 %v511_v0, %v510_v63  ;;  %s764_s30 = sshll.u32 %s967_s19, 1  ;;  %s730_s14 = sshll.u32 %s1152_s8, 1 }
  0xc6   : > { %s577_s5 = sadd.s32 %s963_s18, %s764_s30  ;;  %s280_s11 = scalar_lea.vmem [#allocation4], %s730_s14 }
  0xc7   : > { %v513_v2 = vrot.slane %v512_v1, 2  ;;  %s765_s24 = sshll.u32 %s577_s5, 1  ;;  %s581_s12 = sshll.u32 %s280_s11, 4  ;;  %s582_s12 = int_to_ptr.vmem [resolvable:$true] %s581_s12 }
  0xc8   : > { %s579_s10 = scalar_lea.hbm %s1227_s4, %s765_s24  ;;  %s548_s18 = scalar_lea.sflag [#allocation5], %s1152_s8 }
  0xc9   : > { %v514_v3 = vadd.f32 %v513_v2, %v512_v1  ;;  %s583_s13 = sshll.u32 %s579_s10, 4  ;;  %s901_s5 = scalar_lea.hbm %s1227_s4, 8  ;;  %s584_s13 = int_to_ptr.hbm [resolvable:$true] %s583_s13 }
  0xca   : > { %s895_s19 = sshra.s32 %s584_s13, 4  ;;  %s896_s19 = int_to_ptr.hbm [resolvable:$true] %s895_s19 }
  0xcb   : > { %v515_v4 = vrot.slane %v514_v3, 1  ;;  %s897_s6 = scalar_lea.hbm %s896_s19, 2  ;;  %p902_p13 = scmp.lt.s32.totalorder %s896_s19, %s1227_s4 }
  0xcc   : > { %p898_p10 = scmp.ne.s32.totalorder %s896_s19, %s897_s6  ;;  %p903_p0 = scmp.lt.s32.totalorder %s901_s5, %s897_s6 }
  0xcd   : > { %v516_v5 = vadd.f32 %v515_v4, %v514_v3 }
  0xce   : > { %p899_p11 = pnand %p898_p10, %p1059_p3  ;;  %p904_p1 = por %p903_p0, %p902_p13 }
  0xcf   : > { %v517_v6 = vmul.f32 0.03125, %v516_v5 }
  0xd0   : > { %p900_p12 = pneg %p899_p11 }
  0xd1   : > { %v518_v7 = vsub.f32 %v504_v40, %v517_v6  ;;  %v519_v8 = vsub.f32 %v505_v47, %v517_v6  ;;  %v520_v9 = vsub.f32 %v506_v53, %v517_v6  ;;  %v521_v10 = vsub.f32 %v507_v62, %v517_v6 }
  0xd2   : > { %p905_p2 = pnand %p904_p1, %p900_p12 }
  0xd3   : > { %v522_v11 = vmul.f32 %v518_v7, %v518_v7  ;;  %v523_v12 = vmul.f32 %v519_v8, %v519_v8  ;;  %v524_v13 = vmul.f32 %v520_v9, %v520_v9  ;;  %v525_v15 = vmul.f32 %v521_v10, %v521_v10 }
  0xd5   : > { %v526_v14 = vadd.f32 %v523_v12, %v522_v11 }
  0xd7   : > { %v527_v16 = vadd.f32 %v526_v14, %v524_v13 }
  0xd9   : > { %v528_v17 = vadd.f32 %v527_v16, %v525_v15 }
  0xdb   : > { %v529_v18 = vrot.slane %v528_v17, 4 }
  0xdd   : > { %v530_v19 = vadd.f32 %v529_v18, %v528_v17 }
  0xdf   : > { %v531_v20 = vrot.slane %v530_v19, 2 }
  0xe1   : > { %v532_v21 = vadd.f32 %v531_v20, %v530_v19 }
  0xe3   : > { %v533_v22 = vrot.slane %v532_v21, 1 }
  0xe5   : > { %v534_v23 = vadd.f32 %v533_v22, %v532_v21 }
  0xe7   : > { %v536_v24 = vsel %vm535_vm2, %v516_v5, %v534_v23 }
  0xe8   : > { %537 = vst [vmem:[%s280_s11] sm:$0x3] %v536_v24 }
  0xe9   : > { %908 = shalt.err (!%p905_p2)
}
  0xea   : > { %776 = dma.vmem_to_hbm [thread:$0]  (%p1059_p3), %s582_s12, 32, %s584_s13, %s548_s18  }
  0xeb PF: > { %p786_p4 = scmp.ge.s32.totalorder %s979_s22, 2  ;;  %s595_s8 = sand.u32 1, %s951_s15  }
  0xec   : > { %s596_s23 = scalar_lea.sflag [#allocation3], %s595_s8 }
  0xed   : > { %p780_p5 = pnand %p786_p4, %p1068_p8 }
  0xef   : > { %p781_p6 = pneg %p780_p5 }
  0xf1   : > { %942 = dma.done.wait (%p781_p6), %s596_s23, 512  }
  0xf2   : > { %944 = vsyncadd (%p781_p6), %s596_s23, 4294966784  ;;  %s606_s9 = scalar_lea.sflag [#allocation5], %s595_s8 }
  0xf3   : > { %946 = dma.done.wait (%p781_p6), %s606_s9, 32  }
  0xf4   : > { %948 = vsyncadd (%p781_p6), %s606_s9, 4294967264  ;;  %s21_s22 = sadd.s32 1, %s979_s22   ;;  %s1231_s15 = smov %s955_s16 }
  0xf5   : > { %p18_p7 = scmp.ge.s32.totalorder %s21_s22, 6   ;;  %s1232_s16 = smov %s959_s17 }
  0xf6   : > { %s1233_s17 = smov %s1077_s7  ;;  %s1234_s18 = smov %s971_s20 }
  0xf7   : > { %s1235_s19 = smov %s975_s21  ;;  %s1236_s20 = smov %s1239_s25 }
  0xf8   : > { %s1237_s21 = smov %s1243_s26  ;;  %20 = sbr.rel (!%p18_p7) target bundleno = 7 (0x7), region = 90 }
  0xfd   :  { %612 = vsyncpa [#allocation3], 1 }
  0xfe   :  { %614 = vsyncpa [#allocation3 + $0x1], 1 }
  0xff   :  { %615 = vsyncpa [#allocation5], 1 }
 0x100   :  { %617 = vsyncpa [#allocation5 + $0x1], 1 }

</bundles_post_ra>
